<compile_context>
chip_gen: v7x
topology: tpu7x:2x2x1
jax: 0.10.0
libtpu: 0.0.40
codegen_flags: <defaults>
</compile_context>

<pallas_src>
import functools

import jax
import jax.numpy as jnp
from jax.experimental import pallas as pl
from jax.experimental.pallas import tpu as pltpu


def _round_up(n, m):
    return -(-n // m) * m


# ----------------------------- Pallas kernels ------------------------------

def _pw_kernel(*refs, act, res):
    """Pointwise (1x1) conv tile: bf16 MXU matmul, f32 accumulation,
    optional per-channel PReLU, optional fused residual add."""
    x_ref, w_ref = refs[0], refs[1]
    idx = 2
    a_ref = r_ref = None
    if act:
        a_ref = refs[idx]; idx += 1
    if res:
        r_ref = refs[idx]; idx += 1
    o_ref = refs[idx]

    y = jnp.dot(x_ref[...], w_ref[...], preferred_element_type=jnp.float32)
    if act:
        a = a_ref[...]                       # (1, Cout) broadcasts over rows
        y = jnp.where(y >= 0.0, y, y * a)    # PReLU
    if res:
        y = y + r_ref[...]                   # residual added in f32
    o_ref[...] = y.astype(o_ref.dtype)


def _dw_kernel(x_ref, w_ref, a_ref, o_ref, *, K, stride, TH, Wo):
    """Depthwise KxK conv on one (batch, output-row band) tile + PReLU.

    x_ref: (1, Hb, Wp, C) pre-padded halo band (Hb >= (TH-1)*stride + K)
    o_ref: (1, TH, Wo, C)
    """
    x = x_ref[...]
    w = w_ref[...]                           # (K, K, C)
    C = x.shape[-1]
    Wp = x.shape[2]
    acc = jnp.zeros((1, TH, Wo, C), jnp.float32)
    for kh in range(K):                      # unrolled at trace time
        # one strided row band per kh (7 band slices, not 49 full-tile slices)
        band = jax.lax.slice(
            x, (0, kh, 0, 0),
            (1, kh + stride * (TH - 1) + 1, Wp, C),
            (1, stride, 1, 1))               # (1, TH, Wp, C)
        row_acc = jnp.zeros((1, TH, Wo, C), jnp.float32)
        for kw in range(K):
            patch = jax.lax.slice(
                band, (0, 0, kw, 0),
                (1, TH, kw + stride * (Wo - 1) + 1, C),
                (1, 1, stride, 1))           # (1, TH, Wo, C)
            row_acc = row_acc + patch * w[kh:kh + 1, kw:kw + 1, :]
        acc = acc + row_acc
    a = a_ref[...]                           # (1, C)
    acc = jnp.where(acc >= 0.0, acc, acc * a)            # PReLU
    o_ref[...] = acc.astype(o_ref.dtype)


# ------------------------------ kernel wrappers -----------------------------

def pointwise_conv(x_nhwc, w_mat, alpha=None, residual=None, tn=512):
    """1x1 conv (NHWC) as a row-tiled bf16 matmul; alpha => PReLU; residual => +skip."""
    B, H, W, Cin = x_nhwc.shape
    Cout = w_mat.shape[1]
    N = B * H * W

    x2 = x_nhwc.reshape(N, Cin).astype(jnp.bfloat16)     # bf16 MXU inputs
    wb = w_mat.astype(jnp.bfloat16)

    TN = min(tn, _round_up(N, 8))            # large lane-dense row tile
    Np = _round_up(N, TN)                    # pad rows instead of a giant block
    if Np != N:
        x2 = jnp.pad(x2, ((0, Np - N), (0, 0)))

    inputs = [x2, wb]
    in_specs = [
        pl.BlockSpec((TN, Cin), lambda i: (i, 0)),
        pl.BlockSpec((Cin, Cout), lambda i: (0, 0)),
    ]
    if alpha is not None:
        inputs.append(alpha.reshape(1, Cout).astype(jnp.float32))
        in_specs.append(pl.BlockSpec((1, Cout), lambda i: (0, 0)))
    if residual is not None:
        r2 = residual.reshape(N, Cout).astype(jnp.float32)
        if Np != N:
            r2 = jnp.pad(r2, ((0, Np - N), (0, 0)))
        inputs.append(r2)
        in_specs.append(pl.BlockSpec((TN, Cout), lambda i: (i, 0)))

    kernel = functools.partial(_pw_kernel, act=alpha is not None,
                               res=residual is not None)
    out = pl.pallas_call(
        kernel,
        grid=(Np // TN,),
        in_specs=in_specs,
        out_specs=pl.BlockSpec((TN, Cout), lambda i: (i, 0)),
        out_shape=jax.ShapeDtypeStruct((Np, Cout), jnp.float32),
        compiler_params=pltpu.CompilerParams(
            dimension_semantics=("parallel",),
            vmem_limit_bytes=32 * 1024 * 1024),
    )(*inputs)
    if Np != N:
        out = out[:N]
    return out.reshape(B, H, W, Cout)


def _choose_th(Ho, stride, Wp, Wo, C, K, itemsize, budget_bytes=2 * 1024 * 1024):
    """Largest divisor of Ho whose (input band + output band) fits the budget."""
    best = 1
    for th in range(1, Ho + 1):
        if Ho % th:
            continue
        hb = (th - 1) * stride + K
        tile_bytes = (hb * Wp + th * Wo) * C * itemsize
        if tile_bytes <= budget_bytes:
            best = th
    return best


def depthwise_conv(x_nhwc, w_kkc, alpha, stride, th=None, halo=True):
    """Depthwise KxK conv (NHWC, torch-style padding K//2) + PReLU, tiled over
    (batch, output-row bands) with overlapping halo input windows."""
    B, H, W, C = x_nhwc.shape
    K = w_kkc.shape[0]
    pad = K // 2
    Ho = (H + 2 * pad - K) // stride + 1
    Wo = (W + 2 * pad - K) // stride + 1
    Hp, Wp = H + 2 * pad, W + 2 * pad

    # TODO(synk): fold the zero padding into masked boundary taps / the halo DMA
    # instead of a separate jnp.pad pass over the activation.
    xp = jnp.pad(x_nhwc, ((0, 0), (pad, pad), (pad, pad), (0, 0)))

    if not halo:
        th = Ho                              # one band per image (no Element halo)
    elif th is None:
        th = _choose_th(Ho, stride, Wp, Wo, C, K, xp.dtype.itemsize)
    assert Ho % th == 0, (Ho, th)
    hb = (th - 1) * stride + K
    n_h = Ho // th

    if halo:
        # Overlapping halo windows: element-offset index map on the H axis.
        x_spec = pl.BlockSpec((1, pl.Element(hb), Wp, C),
                              lambda b, h: (b, h * (th * stride), 0, 0))
    else:
        x_spec = pl.BlockSpec((1, Hp, Wp, C), lambda b, h: (b, 0, 0, 0))

    kernel = functools.partial(_dw_kernel, K=K, stride=stride, TH=th, Wo=Wo)
    return pl.pallas_call(
        kernel,
        grid=(B, n_h),
        in_specs=[
            x_spec,
            pl.BlockSpec((K, K, C), lambda b, h: (0, 0, 0)),
            pl.BlockSpec((1, C), lambda b, h: (0, 0)),
        ],
        out_specs=pl.BlockSpec((1, th, Wo, C), lambda b, h: (b, h, 0, 0)),
        out_shape=jax.ShapeDtypeStruct((B, Ho, Wo, C), x_nhwc.dtype),
        compiler_params=pltpu.CompilerParams(
            dimension_semantics=("parallel", "parallel"),
            vmem_limit_bytes=32 * 1024 * 1024),
    )(xp, w_kkc, alpha.reshape(1, C))


# ------------------------------- model (glue) -------------------------------

def pixel_shuffle_nhwc(x, r):
    """PixelShuffle(r), semantics identical to torch.nn.PixelShuffle, in NHWC."""
    B, H, W, Crr = x.shape
    C = Crr // (r * r)
    x = x.reshape(B, H, W, C, r, r)
    x = jnp.transpose(x, (0, 1, 4, 2, 5, 3))
    return x.reshape(B, H * r, W * r, C)


def pixel_unshuffle_nhwc(x, r):
    """Exact inverse of pixel_shuffle_nhwc (same channel ordering)."""
    B, H, W, C = x.shape
    x = x.reshape(B, H // r, r, W // r, r, C)
    x = jnp.transpose(x, (0, 1, 3, 5, 2, 4))          # (b, h2, w2, c, dy, dx)
    return x.reshape(B, H // r, W // r, C * r * r)


def dsc_forward(x, p, stride, residual, extra_residual=None, dw_halo=True):
    out = pointwise_conv(x, p["w1"], alpha=p["a1"])              # CAB(k=1)+PReLU
    out = depthwise_conv(out, p["w2"], p["a2"], stride, halo=dw_halo)  # CAB(k=7,g=C)+PReLU
    res = x if residual else extra_residual
    out = pointwise_conv(out, p["w3"], alpha=None, residual=res)  # CAB(k=1), no act
    return out


def bs_forward(x_nchw, params, dw_halo=True):
    x = jnp.transpose(x_nchw, (0, 2, 3, 1))                      # NCHW -> NHWC
    out = dsc_forward(x, params["dsc1"], stride=2, residual=False, dw_halo=dw_halo)
    out = dsc_forward(out, params["dsc2"], stride=1, residual=True, dw_halo=dw_halo)
    # Fuse PixelShuffle + final residual: add pixel-unshuffled(x) inside dsc3's
    # last 1x1-conv kernel; a single shuffle then yields shuffle(conv_out) + x.
    x_unshuf = pixel_unshuffle_nhwc(x, 2)
    out = dsc_forward(out, params["dsc3"], stride=1, residual=False,
                      extra_residual=x_unshuf, dw_halo=dw_halo)
    out = pixel_shuffle_nhwc(out, 2)
    return jnp.transpose(out, (0, 3, 1, 2))                      # NHWC -> NCHW


def init_params(key, base_plains, channel_ratio_dwc=4, k=7):
    def dsc_params(kk, cin, cout):
        ks = jax.random.split(kk, 5)
        mid = cin * channel_ratio_dwc
        return dict(
            w1=jax.random.normal(ks[0], (cin, mid), jnp.float32) * 0.2,
            a1=jax.random.uniform(ks[1], (mid,), jnp.float32, minval=0.1, maxval=0.4),
            w2=jax.random.normal(ks[2], (k, k, mid), jnp.float32) * 0.2,
            a2=jax.random.uniform(ks[3], (mid,), jnp.float32, minval=0.1, maxval=0.4),
            w3=jax.random.normal(ks[4], (mid, cout), jnp.float32) * 0.2,
        )
    k1, k2, k3 = jax.random.split(key, 3)
    return {
        "dsc1": dsc_params(k1, base_plains, base_plains * 2),
        "dsc2": dsc_params(k2, base_plains * 2, base_plains * 2),
        "dsc3": dsc_params(k3, base_plains * 2, base_plains * 4),
    }


# --------------------------- pure-JAX reference ------------------------------

def _ref_bs_forward(x_nchw, params):
    def prelu(y, a):
        return jnp.where(y >= 0, y, y * a)

    def pw(y, w):
        w4 = w.reshape(1, 1, w.shape[0], w.shape[1])              # HWIO
        return jax.lax.conv_general_dilated(
            y, w4, (1, 1), "VALID",
            dimension_numbers=("NHWC", "HWIO", "NHWC"))

    def dw(y, w, stride):
        C = y.shape[-1]
        K = w.shape[0]
        pad = K // 2
        w4 = w.reshape(K, K, 1, C)
        return jax.lax.conv_general_dilated(
            y, w4, (stride, stride), [(pad, pad), (pad, pad)],
            feature_group_count=C,
            dimension_numbers=("NHWC", "HWIO", "NHWC"))

    def dsc(y, p, stride, residual):
        out = prelu(pw(y, p["w1"]), p["a1"])
        out = prelu(dw(out, p["w2"], stride), p["a2"])
        out = pw(out, p["w3"])
        if residual:
            out = out + y
        return out

    x = jnp.transpose(x_nchw, (0, 2, 3, 1))
    out = dsc(x, params["dsc1"], 2, False)
    out = dsc(out, params["dsc2"], 1, True)
    out = dsc(out, params["dsc3"], 1, False)
    out = pixel_shuffle_nhwc(out, 2)
    out = out + x
    return jnp.transpose(out, (0, 3, 1, 2))


# ----------------------------------- main ------------------------------------

if __name__ == "__main__":
    base_plains = 8          # small synthetic config (module default is 64)
    B, H, W = 2, 16, 16

    key = jax.random.PRNGKey(0)
    kx, kp, kt1, kt2, kt3, kq1, kq2 = jax.random.split(key, 7)
    x = jax.random.normal(kx, (B, base_plains, H, W), jnp.float32)
    params = init_params(kp, base_plains)

    # --- micro-test 1: depthwise halo tiling (forces several H bands) --------
    Cdw = 32
    xt = jax.random.normal(kt1, (2, 16, 16, Cdw), jnp.float32)
    wt = jax.random.normal(kt2, (7, 7, Cdw), jnp.float32) * 0.2
    at = jax.random.uniform(kt3, (Cdw,), jnp.float32, minval=0.1, maxval=0.4)

    def dw_ref(xx, ww, aa, stride):
        C = xx.shape[-1]; K = ww.shape[0]; p = K // 2
        y = jax.lax.conv_general_dilated(
            xx, ww.reshape(K, K, 1, C), (stride, stride), [(p, p), (p, p)],
            feature_group_count=C, dimension_numbers=("NHWC", "HWIO", "NHWC"))
        return jnp.where(y >= 0, y, y * aa)

    use_halo = True
    try:
        for stride, th in ((1, 4), (2, 2)):
            y = jax.block_until_ready(depthwise_conv(xt, wt, at, stride, th=th))
            r = dw_ref(xt, wt, at, stride)
            e = float(jnp.max(jnp.abs(y - r)))
            if e > 1e-4:
                raise AssertionError(f"depthwise halo mismatch: {e}")
    except Exception:
        # TODO(synk): element-offset halo BlockSpec unavailable/failed here;
        # falling back to whole-image depthwise bands (still tiled over batch).
        use_halo = False

    # --- micro-test 2: pointwise tiling + row padding (N=600 -> 2 row tiles) --
    xq = jax.random.normal(kq1, (3, 10, 20, 16), jnp.float32)
    wq = jax.random.normal(kq2, (16, 32), jnp.float32) * 0.2
    aq = jnp.full((32,), 0.25, jnp.float32)
    yq = jax.block_until_ready(pointwise_conv(xq, wq, alpha=aq))
    rq = jnp.einsum("bhwc,cd->bhwd", xq, wq)
    rq = jnp.where(rq >= 0, rq, rq * aq)
    eq = float(jnp.max(jnp.abs(yq - rq)))
    if eq > 2e-2:
        raise ValueError(f"pointwise mismatch: max abs err {eq}")

    # --- full model -----------------------------------------------------------
    fwd = jax.jit(functools.partial(bs_forward, params=params, dw_halo=use_halo))
    out = jax.block_until_ready(fwd(x))
    assert out.shape == x.shape, (out.shape, x.shape)

    ref = _ref_bs_forward(x, params)
    err = float(jnp.max(jnp.abs(out - ref)))
    if err > 3e-2:   # tolerance accounts for bf16 matmul inputs vs f32 reference
        raise ValueError(f"Pallas vs reference mismatch: max abs err {err}")

    print("KERNEL_OK")
</pallas_src>

<mosaic_0001>
module attributes {stable_mosaic.version = 11 : i64} {
  func.func @_pw_kernel(%arg0: i32, %arg1: memref<512x16xbf16, #tpu.memory_space<vmem>>, %arg2: memref<16x32xbf16, #tpu.memory_space<vmem>>, %arg3: memref<1x32xf32, #tpu.memory_space<vmem>>, %arg4: memref<512x32xf32, #tpu.memory_space<vmem>>) attributes {dimension_semantics = [#tpu.dimension_semantics<parallel>], iteration_bounds = array<i64: 2>, scalar_prefetch = 0 : i64, scratch_operands = 0 : i64, tpu.core_type = #tpu.core_type<tc>, window_params = [{transform_indices = @transform_0, window_bounds = array<i64: 512, 16>}, {pipeline_mode = #tpu.pipeline_mode<synchronous>, transform_indices = @transform_1, window_bounds = array<i64: 16, 32>}, {pipeline_mode = #tpu.pipeline_mode<synchronous>, transform_indices = @transform_2, window_bounds = array<i64: 1, 32>}, {transform_indices = @transform_3, window_bounds = array<i64: 512, 32>}]} {
    %c0 = arith.constant 0 : index
    %c0_0 = arith.constant 0 : index
    %0 = vector.load %arg1[%c0, %c0_0] : memref<512x16xbf16, #tpu.memory_space<vmem>>, vector<512x16xbf16>
    %c0_1 = arith.constant 0 : index
    %c0_2 = arith.constant 0 : index
    %1 = vector.load %arg2[%c0_1, %c0_2] : memref<16x32xbf16, #tpu.memory_space<vmem>>, vector<16x32xbf16>
    %cst = arith.constant dense<0.000000e+00> : vector<512x32xf32>
    %2 = tpu.matmul %0, %1, %cst {dimension_numbers = #tpu.dot_dimension_numbers<[1], [0], [0], [1], [0, 0, 1, 1], [], []>} : vector<512x16xbf16>, vector<16x32xbf16>, vector<512x32xf32> -> vector<512x32xf32>
    %c0_3 = arith.constant 0 : index
    %c0_4 = arith.constant 0 : index
    %3 = vector.load %arg3[%c0_3, %c0_4] : memref<1x32xf32, #tpu.memory_space<vmem>>, vector<1x32xf32>
    %cst_5 = arith.constant 0.000000e+00 : f32
    %4 = vector.broadcast %cst_5 : f32 to vector<512x32xf32>
    %5 = arith.cmpf oge, %2, %4 : vector<512x32xf32>
    %6 = vector.broadcast %3 : vector<1x32xf32> to vector<512x32xf32>
    %7 = arith.mulf %2, %6 : vector<512x32xf32>
    %8 = arith.select %5, %2, %7 : vector<512x32xi1>, vector<512x32xf32>
    %c0_6 = arith.constant 0 : index
    %c0_7 = arith.constant 0 : index
    %9 = vector.load %arg4[%c0_6, %c0_7] : memref<512x32xf32, #tpu.memory_space<vmem>>, vector<512x32xf32>
    tpu.vector_store %arg4[%c0_6, %c0_7], %8 {strides = array<i32>} : memref<512x32xf32, #tpu.memory_space<vmem>>, vector<512x32xf32>,
    return
  }
  func.func @transform_0(%arg0: i32) -> (i32, i32) {
    %c0_i32 = arith.constant 0 : i32
    %c0_i32_0 = arith.constant 0 : i32
    return %arg0, %c0_i32 : i32, i32
  }
  func.func @transform_1(%arg0: i32) -> (i32, i32) {
    %c0_i32 = arith.constant 0 : i32
    %c0_i32_0 = arith.constant 0 : i32
    %c0_i32_1 = arith.constant 0 : i32
    return %c0_i32, %c0_i32_0 : i32, i32
  }
  func.func @transform_2(%arg0: i32) -> (i32, i32) {
    %c0_i32 = arith.constant 0 : i32
    %c0_i32_0 = arith.constant 0 : i32
    %c0_i32_1 = arith.constant 0 : i32
    return %c0_i32, %c0_i32_0 : i32, i32
  }
  func.func @transform_3(%arg0: i32) -> (i32, i32) {
    %c0_i32 = arith.constant 0 : i32
    %c0_i32_0 = arith.constant 0 : i32
    return %arg0, %c0_i32 : i32, i32
  }
}

</mosaic_0001>

<bundles_post_ra>
// kernel: tpu_custom_call.1
= control target key start
LH: loop header
LB: loop body
LE: loop exit
PB: predicated region body
PF: predicated region fallthrough
CT: control target
= control target key end

     0   :  { %s1360_s12 = smov 0   ;;  %s1657_s0 = inlined_call_operand.vmem [shape: bf16[1024,16], index: 0, kind: input, shape index: {}]   ;;  %s1658_s1 = inlined_call_operand.vmem [shape: bf16[16,32], index: 1, kind: input, shape index: {}]   ;;  %s1659_s2 = inlined_call_operand.vmem [shape: f32[1,32], index: 2, kind: input, shape index: {}]   ;;  %s1660_s3 = inlined_call_operand.vmem [shape: f32[1024,32], index: 3, kind: output, shape index: {}]  }
   0x1 LB: > { %s1113_s13 = sadd.s32 4294967295, %s1338_s12   ;;  %p1117_p0 = scmp.ge.s32.totalorder %s1338_s12, 1  ;;  %s1338_s12 = sphi %s1360_s12, %s13_s12  }
   0x2   : > { %p138_p1 = scmp.lt.s32.totalorder %s1338_s12, 3 }
   0x4   : > { %p139_p2 = pnand %p1117_p0, %p138_p1 }
   0x5   : > { %v1299_v0 = vld [vmem:[%s1658_s1] sm:$0xff] (!%p139_p2)   ;;  %s1118_s16 = sshll.u32 (!%p139_p2), %s1113_s13, 6  ;;  %vm407_vm0 = vcmask (!%p139_p2), 130048   ;;  %vm992_vm2 = vcmask (!%p139_p2), 261120  }
   0x6   : > { %142 = sbr.rel (%p139_p2) target bundleno = 295 (0x127), region = 32  ;;  %p163_p3 = scmp.lt.s32.totalorder (!%p139_p2), %s1118_s16, 127  ;;  %1223 = vmatprep.subr.bf16.mxu0 (!%p139_p2), %v1299_v0  ;;  %1289 = vmatprep.subr.bf16.mxu1 (!%p139_p2), %v1299_v0  ;;  %v1447_v33 = vld [vmem:[%s1659_s2] ss:$0 sm:$0xff] (!%p139_p2) }
   0x7   : > { %1224 = vmatpush3.bf16.msra.mxu0 (!%p139_p2), %v1299_v0  ;;  %1290 = vmatpush3.bf16.msra.mxu1 (!%p139_p2), %v1299_v0 }
   0xd   : > { %s1662_s16 = smov (!%p163_p3, %s1118_s16), 127 }
   0xe   : > { %s1119_s17 = sshll.u32 %s1662_s16, 2  ;;  %s1121_s21 = sshll.u32 %s1662_s16, 3 }
   0xf   : > { %s1377_s20 = scalar_lea.vmem %s1657_s0, %s1119_s17  ;;  %s1452_s26 = scalar_lea.vmem %s1660_s3, %s1121_s21 }
  0x10   : > { %v1300_v1 = vld [vmem:[%s1377_s20] sm:$0xff]   ;;  %v1302_v3 = vld [vmem:[%s1377_s20 + $0x8] sm:$0xff]   ;;  %v1304_v5 = vld [vmem:[%s1377_s20 + $0x10] sm:$0xff]  }
  0x11   : > { %v1301_v2 = vld [vmem:[%s1377_s20 + $0x80] sm:$0xff]   ;;  %1225 = vmatprep.mubr.msk.bf16.mxu0 %vm407_vm0, %v1300_v1  ;;  %v1303_v4 = vld [vmem:[%s1377_s20 + $0x88] sm:$0xff]   ;;  %v1305_v6 = vld [vmem:[%s1377_s20 + $0x90] sm:$0xff]  }
  0x12   : > { %1257 = vmatprep.mubr.msk.bf16.mxu1 %vm407_vm0, %v1301_v2  ;;  %1226 = vmatmul.mubr.msk.bf16.vlgmr.msra.gmra.mrb[0].mxu0 %vm407_vm0, %v1302_v3  ;;  %v1306_v7 = vld [vmem:[%s1377_s20 + $0x18] sm:$0xff]   ;;  %v1308_v9 = vld [vmem:[%s1377_s20 + $0x20] sm:$0xff]   ;;  %v1310_v11 = vld [vmem:[%s1377_s20 + $0x28] sm:$0xff]  }
  0x13   : > { %1258 = vmatmul.mubr.msk.bf16.vlgmr.msra.gmra.mrb[0].mxu1 %vm407_vm0, %v1303_v4  ;;  %1229 = vmatprep.mubr.msk.bf16.mxu0 %vm407_vm0, %v1304_v5  ;;  %v1307_v8 = vld [vmem:[%s1377_s20 + $0x98] sm:$0xff]   ;;  %v1309_v10 = vld [vmem:[%s1377_s20 + $0xa0] sm:$0xff]   ;;  %v1311_v12 = vld [vmem:[%s1377_s20 + $0xa8] sm:$0xff]  }
  0x14   : > { %1261 = vmatprep.mubr.msk.bf16.mxu1 %vm407_vm0, %v1305_v6  ;;  %v1312_v13 = vld [vmem:[%s1377_s20 + $0x30] sm:$0xff]   ;;  %v1314_v15 = vld [vmem:[%s1377_s20 + $0x38] sm:$0xff]   ;;  %v1316_v17 = vld [vmem:[%s1377_s20 + $0x40] sm:$0xff]  }
  0x15   : > { %v1313_v14 = vld [vmem:[%s1377_s20 + $0xb0] sm:$0xff]   ;;  %v1315_v16 = vld [vmem:[%s1377_s20 + $0xb8] sm:$0xff]   ;;  %v1317_v18 = vld [vmem:[%s1377_s20 + $0xc0] sm:$0xff]  }
  0x16   : > { %v1318_v19 = vld [vmem:[%s1377_s20 + $0x48] sm:$0xff]   ;;  %v1320_v21 = vld [vmem:[%s1377_s20 + $0x50] sm:$0xff]   ;;  %v1322_v23 = vld [vmem:[%s1377_s20 + $0x58] sm:$0xff]  }
  0x17   : > { %v1319_v20 = vld [vmem:[%s1377_s20 + $0xc8] sm:$0xff]   ;;  %v1321_v22 = vld [vmem:[%s1377_s20 + $0xd0] sm:$0xff]   ;;  %v1323_v24 = vld [vmem:[%s1377_s20 + $0xd8] sm:$0xff]  }
  0x18   : > { %v1324_v25 = vld [vmem:[%s1377_s20 + $0x60] sm:$0xff]   ;;  %v1326_v27 = vld [vmem:[%s1377_s20 + $0x68] sm:$0xff]   ;;  %v1328_v29 = vld [vmem:[%s1377_s20 + $0x70] sm:$0xff]  }
  0x19   : > { %v1325_v26 = vld [vmem:[%s1377_s20 + $0xe0] sm:$0xff]   ;;  %v1327_v28 = vld [vmem:[%s1377_s20 + $0xe8] sm:$0xff]   ;;  %v1329_v30 = vld [vmem:[%s1377_s20 + $0xf0] sm:$0xff]  }
  0x1a   : > { %1230 = vmatmul.mubr.msk.bf16.gmra.mrb[4].mxu0 %vm407_vm0, %v1306_v7  ;;  %v1330_v31 = vld [vmem:[%s1377_s20 + $0x78] sm:$0xff]  }
  0x1b   : > { %1262 = vmatmul.mubr.msk.bf16.gmra.mrb[4].mxu1 %vm407_vm0, %v1307_v8  ;;  %1233 = vmatprep.mubr.msk.bf16.mxu0 %vm407_vm0, %v1308_v9  ;;  %v1331_v32 = vld [vmem:[%s1377_s20 + $0xf8] sm:$0xff]  }
  0x1c   : > { %1265 = vmatprep.mubr.msk.bf16.mxu1 %vm407_vm0, %v1309_v10 }
  0x22   : > { %1234 = vmatmul.mubr.msk.bf16.gmra.mrb[8].mxu0 %vm407_vm0, %v1310_v11 }
  0x23   : > { %1266 = vmatmul.mubr.msk.bf16.gmra.mrb[8].mxu1 %vm407_vm0, %v1311_v12  ;;  %1237 = vmatprep.mubr.msk.bf16.mxu0 %vm407_vm0, %v1312_v13 }
  0x24   : > { %1269 = vmatprep.mubr.msk.bf16.mxu1 %vm407_vm0, %v1313_v14 }
  0x2a   : > { %1238 = vmatmul.mubr.msk.bf16.gmra.mrb[12].mxu0 %vm407_vm0, %v1314_v15 }
  0x2b   : > { %1270 = vmatmul.mubr.msk.bf16.gmra.mrb[12].mxu1 %vm407_vm0, %v1315_v16  ;;  %1241 = vmatprep.mubr.msk.bf16.mxu0 %vm407_vm0, %v1316_v17 }
  0x2c   : > { %1273 = vmatprep.mubr.msk.bf16.mxu1 %vm407_vm0, %v1317_v18 }
  0x32   : > { %1242 = vmatmul.mubr.msk.bf16.gmra.mrb[16].mxu0 %vm407_vm0, %v1318_v19 }
  0x33   : > { %1274 = vmatmul.mubr.msk.bf16.gmra.mrb[16].mxu1 %vm407_vm0, %v1319_v20  ;;  %1245 = vmatprep.mubr.msk.bf16.mxu0 %vm407_vm0, %v1320_v21 }
  0x34   : > { %1277 = vmatprep.mubr.msk.bf16.mxu1 %vm407_vm0, %v1321_v22 }
  0x3a   : > { %1246 = vmatmul.mubr.msk.bf16.gmra.mrb[20].mxu0 %vm407_vm0, %v1322_v23 }
  0x3b   : > { %1278 = vmatmul.mubr.msk.bf16.gmra.mrb[20].mxu1 %vm407_vm0, %v1323_v24  ;;  %1249 = vmatprep.mubr.msk.bf16.mxu0 %vm407_vm0, %v1324_v25 }
  0x3c   : > { %1281 = vmatprep.mubr.msk.bf16.mxu1 %vm407_vm0, %v1325_v26 }
  0x42   : > { %1250 = vmatmul.mubr.msk.bf16.gmra.mrb[24].mxu0 %vm407_vm0, %v1326_v27 }
  0x43   : > { %1282 = vmatmul.mubr.msk.bf16.gmra.mrb[24].mxu1 %vm407_vm0, %v1327_v28  ;;  %1253 = vmatprep.mubr.msk.bf16.mxu0 %vm407_vm0, %v1328_v29 }
  0x44   : > { %1285 = vmatprep.mubr.msk.bf16.mxu1 %vm407_vm0, %v1329_v30 }
  0x4a   : > { %1254 = vmatmul.mubr.msk.bf16.gmra.mrb[28].mxu0 %vm407_vm0, %v1330_v31 }
  0x4b   : > { %1286 = vmatmul.mubr.msk.bf16.gmra.mrb[28].mxu1 %vm407_vm0, %v1331_v32 }
  0xe5   : > { %v1227_v34 = vpop.f32.mrb[0].mxu0 }
  0xe6   : > { %vm796_vm1 = vcmp.ge.f32.partialorder %v1227_v34, 0.0  ;;  %v866_v35 = vmul.f32 %v1227_v34, %v1447_v33  ;;  %v1259_v36 = vpop.f32.mrb[0].mxu1  ;;  %v538_v37 = vpop.f32.mrb[1].mxu0 }
  0xe7   : > { %vm828_vm3 = vcmp.ge.f32.partialorder %v1259_v36, 0.0  ;;  %v898_v38 = vmul.f32 %v1259_v36, %v1447_v33  ;;  %vm794_vm4 = vcmp.ge.f32.partialorder %v538_v37, 0.0  ;;  %v864_v39 = vmul.f32 %v1447_v33, %v538_v37  ;;  %v666_v40 = vpop.f32.mrb[1].mxu1  ;;  %v1228_v41 = vpop.f32.mrb[2].mxu0 }
  0xe8   : > { %v930_v42 = vsel %vm796_vm1, %v1227_v34, %v866_v35  ;;  %vm826_vm5 = vcmp.ge.f32.partialorder %v666_v40, 0.0  ;;  %v896_v43 = vmul.f32 %v1447_v33, %v666_v40  ;;  %vm797_vm6 = vcmp.ge.f32.partialorder %v1228_v41, 0.0  ;;  %v1260_v44 = vpop.f32.mrb[2].mxu1  ;;  %v541_v45 = vpop.f32.mrb[3].mxu0 }
  0xe9   : > { %995 = vst.msk [vmem:[%s1452_s26 + $0x10] sm:$0xff] %vm992_vm2, %v930_v42  ;;  %v962_v46 = vsel %vm828_vm3, %v1259_v36, %v898_v38  ;;  %v928_v47 = vsel %vm794_vm4, %v538_v37, %v864_v39  ;;  %v867_v48 = vmul.f32 %v1228_v41, %v1447_v33  ;;  %vm829_vm7 = vcmp.ge.f32.partialorder %v1260_v44, 0.0  ;;  %v669_v49 = vpop.f32.mrb[3].mxu1 }
  0xea   : > { %1027 = vst.msk [vmem:[%s1452_s26 + $0x110] sm:$0xff] %vm992_vm2, %v962_v46  ;;  %993 = vst.msk [vmem:[%s1452_s26] sm:$0xff] %vm992_vm2, %v928_v47  ;;  %v960_v50 = vsel %vm826_vm5, %v666_v40, %v896_v43  ;;  %v899_v51 = vmul.f32 %v1260_v44, %v1447_v33  ;;  %vm795_vm8 = vcmp.ge.f32.partialorder %v541_v45, 0.0  ;;  %v865_v52 = vmul.f32 %v1447_v33, %v541_v45 }
  0xeb   : > { %1025 = vst.msk [vmem:[%s1452_s26 + $0x100] sm:$0xff] %vm992_vm2, %v960_v50  ;;  %v931_v53 = vsel %vm797_vm6, %v1228_v41, %v867_v48  ;;  %vm827_vm9 = vcmp.ge.f32.partialorder %v669_v49, 0.0  ;;  %v897_v54 = vmul.f32 %v1447_v33, %v669_v49 }
  0xec   : > { %996 = vst.msk [vmem:[%s1452_s26 + $0x18] sm:$0xff] %vm992_vm2, %v931_v53  ;;  %v963_v55 = vsel %vm829_vm7, %v1260_v44, %v899_v51  ;;  %v929_v56 = vsel %vm795_vm8, %v541_v45, %v865_v52 }
  0xed   : > { %1028 = vst.msk [vmem:[%s1452_s26 + $0x118] sm:$0xff] %vm992_vm2, %v963_v55  ;;  %994 = vst.msk [vmem:[%s1452_s26 + $0x8] sm:$0xff] %vm992_vm2, %v929_v56  ;;  %v961_v57 = vsel %vm827_vm9, %v669_v49, %v897_v54  ;;  %v1231_v58 = vpop.f32.mrb[4].mxu0 }
  0xee   : > { %1026 = vst.msk [vmem:[%s1452_s26 + $0x108] sm:$0xff] %vm992_vm2, %v961_v57  ;;  %vm800_vm10 = vcmp.ge.f32.partialorder %v1231_v58, 0.0  ;;  %v870_v59 = vmul.f32 %v1231_v58, %v1447_v33  ;;  %v1263_v60 = vpop.f32.mrb[4].mxu1  ;;  %v554_v61 = vpop.f32.mrb[5].mxu0 }
  0xef   : > { %vm832_vm11 = vcmp.ge.f32.partialorder %v1263_v60, 0.0  ;;  %v902_v62 = vmul.f32 %v1263_v60, %v1447_v33  ;;  %vm798_vm12 = vcmp.ge.f32.partialorder %v554_v61, 0.0  ;;  %v868_v63 = vmul.f32 %v1447_v33, %v554_v61  ;;  %v682_v0 = vpop.f32.mrb[5].mxu1  ;;  %v1232_v1 = vpop.f32.mrb[6].mxu0 }
  0xf0   : > { %v934_v2 = vsel %vm800_vm10, %v1231_v58, %v870_v59  ;;  %vm830_vm13 = vcmp.ge.f32.partialorder %v682_v0, 0.0  ;;  %v900_v3 = vmul.f32 %v1447_v33, %v682_v0  ;;  %vm801_vm14 = vcmp.ge.f32.partialorder %v1232_v1, 0.0  ;;  %v1264_v4 = vpop.f32.mrb[6].mxu1  ;;  %v557_v5 = vpop.f32.mrb[7].mxu0 }
  0xf1   : > { %999 = vst.msk [vmem:[%s1452_s26 + $0x30] sm:$0xff] %vm992_vm2, %v934_v2  ;;  %v966_v6 = vsel %vm832_vm11, %v1263_v60, %v902_v62  ;;  %v932_v7 = vsel %vm798_vm12, %v554_v61, %v868_v63  ;;  %v871_v8 = vmul.f32 %v1232_v1, %v1447_v33  ;;  %vm833_vm15 = vcmp.ge.f32.partialorder %v1264_v4, 0.0  ;;  %v685_v9 = vpop.f32.mrb[7].mxu1 }
  0xf2   : > { %1031 = vst.msk [vmem:[%s1452_s26 + $0x130] sm:$0xff] %vm992_vm2, %v966_v6  ;;  %997 = vst.msk [vmem:[%s1452_s26 + $0x20] sm:$0xff] %vm992_vm2, %v932_v7  ;;  %v964_v10 = vsel %vm830_vm13, %v682_v0, %v900_v3  ;;  %v903_v11 = vmul.f32 %v1264_v4, %v1447_v33  ;;  %vm799_vm0 = vcmp.ge.f32.partialorder %v557_v5, 0.0  ;;  %v869_v12 = vmul.f32 %v1447_v33, %v557_v5 }
  0xf3   : > { %1029 = vst.msk [vmem:[%s1452_s26 + $0x120] sm:$0xff] %vm992_vm2, %v964_v10  ;;  %v935_v13 = vsel %vm801_vm14, %v1232_v1, %v871_v8  ;;  %vm831_vm1 = vcmp.ge.f32.partialorder %v685_v9, 0.0  ;;  %v901_v14 = vmul.f32 %v1447_v33, %v685_v9 }
  0xf4   : > { %1000 = vst.msk [vmem:[%s1452_s26 + $0x38] sm:$0xff] %vm992_vm2, %v935_v13  ;;  %v967_v15 = vsel %vm833_vm15, %v1264_v4, %v903_v11  ;;  %v933_v16 = vsel %vm799_vm0, %v557_v5, %v869_v12 }
  0xf5   : > { %1032 = vst.msk [vmem:[%s1452_s26 + $0x138] sm:$0xff] %vm992_vm2, %v967_v15  ;;  %998 = vst.msk [vmem:[%s1452_s26 + $0x28] sm:$0xff] %vm992_vm2, %v933_v16  ;;  %v965_v17 = vsel %vm831_vm1, %v685_v9, %v901_v14  ;;  %v1235_v18 = vpop.f32.mrb[8].mxu0 }
  0xf6   : > { %1030 = vst.msk [vmem:[%s1452_s26 + $0x128] sm:$0xff] %vm992_vm2, %v965_v17  ;;  %vm804_vm3 = vcmp.ge.f32.partialorder %v1235_v18, 0.0  ;;  %v874_v19 = vmul.f32 %v1235_v18, %v1447_v33  ;;  %v1267_v20 = vpop.f32.mrb[8].mxu1  ;;  %v570_v21 = vpop.f32.mrb[9].mxu0 }
  0xf7   : > { %vm836_vm4 = vcmp.ge.f32.partialorder %v1267_v20, 0.0  ;;  %v906_v22 = vmul.f32 %v1267_v20, %v1447_v33  ;;  %vm802_vm5 = vcmp.ge.f32.partialorder %v570_v21, 0.0  ;;  %v872_v23 = vmul.f32 %v1447_v33, %v570_v21  ;;  %v698_v24 = vpop.f32.mrb[9].mxu1  ;;  %v1236_v25 = vpop.f32.mrb[10].mxu0 }
  0xf8   : > { %v938_v26 = vsel %vm804_vm3, %v1235_v18, %v874_v19  ;;  %vm834_vm6 = vcmp.ge.f32.partialorder %v698_v24, 0.0  ;;  %v904_v27 = vmul.f32 %v1447_v33, %v698_v24  ;;  %vm805_vm7 = vcmp.ge.f32.partialorder %v1236_v25, 0.0  ;;  %v1268_v28 = vpop.f32.mrb[10].mxu1  ;;  %v573_v29 = vpop.f32.mrb[11].mxu0 }
  0xf9   : > { %1003 = vst.msk [vmem:[%s1452_s26 + $0x50] sm:$0xff] %vm992_vm2, %v938_v26  ;;  %v970_v30 = vsel %vm836_vm4, %v1267_v20, %v906_v22  ;;  %v936_v31 = vsel %vm802_vm5, %v570_v21, %v872_v23  ;;  %v875_v32 = vmul.f32 %v1236_v25, %v1447_v33  ;;  %vm837_vm8 = vcmp.ge.f32.partialorder %v1268_v28, 0.0  ;;  %v701_v34 = vpop.f32.mrb[11].mxu1 }
  0xfa   : > { %1035 = vst.msk [vmem:[%s1452_s26 + $0x150] sm:$0xff] %vm992_vm2, %v970_v30  ;;  %1001 = vst.msk [vmem:[%s1452_s26 + $0x40] sm:$0xff] %vm992_vm2, %v936_v31  ;;  %v968_v35 = vsel %vm834_vm6, %v698_v24, %v904_v27  ;;  %v907_v36 = vmul.f32 %v1268_v28, %v1447_v33  ;;  %vm803_vm9 = vcmp.ge.f32.partialorder %v573_v29, 0.0  ;;  %v873_v37 = vmul.f32 %v1447_v33, %v573_v29 }
  0xfb   : > { %1033 = vst.msk [vmem:[%s1452_s26 + $0x140] sm:$0xff] %vm992_vm2, %v968_v35  ;;  %v939_v38 = vsel %vm805_vm7, %v1236_v25, %v875_v32  ;;  %vm835_vm10 = vcmp.ge.f32.partialorder %v701_v34, 0.0  ;;  %v905_v39 = vmul.f32 %v1447_v33, %v701_v34 }
  0xfc   : > { %1004 = vst.msk [vmem:[%s1452_s26 + $0x58] sm:$0xff] %vm992_vm2, %v939_v38  ;;  %v971_v40 = vsel %vm837_vm8, %v1268_v28, %v907_v36  ;;  %v937_v41 = vsel %vm803_vm9, %v573_v29, %v873_v37 }
  0xfd   : > { %1036 = vst.msk [vmem:[%s1452_s26 + $0x158] sm:$0xff] %vm992_vm2, %v971_v40  ;;  %1002 = vst.msk [vmem:[%s1452_s26 + $0x48] sm:$0xff] %vm992_vm2, %v937_v41  ;;  %v969_v42 = vsel %vm835_vm10, %v701_v34, %v905_v39  ;;  %v1239_v43 = vpop.f32.mrb[12].mxu0 }
  0xfe   : > { %1034 = vst.msk [vmem:[%s1452_s26 + $0x148] sm:$0xff] %vm992_vm2, %v969_v42  ;;  %vm808_vm11 = vcmp.ge.f32.partialorder %v1239_v43, 0.0  ;;  %v878_v44 = vmul.f32 %v1239_v43, %v1447_v33  ;;  %v1271_v45 = vpop.f32.mrb[12].mxu1  ;;  %v586_v46 = vpop.f32.mrb[13].mxu0 }
  0xff   : > { %vm840_vm12 = vcmp.ge.f32.partialorder %v1271_v45, 0.0  ;;  %v910_v47 = vmul.f32 %v1271_v45, %v1447_v33  ;;  %vm806_vm13 = vcmp.ge.f32.partialorder %v586_v46, 0.0  ;;  %v876_v48 = vmul.f32 %v1447_v33, %v586_v46  ;;  %v714_v49 = vpop.f32.mrb[13].mxu1  ;;  %v1240_v50 = vpop.f32.mrb[14].mxu0 }
 0x100   : > { %v942_v51 = vsel %vm808_vm11, %v1239_v43, %v878_v44  ;;  %vm838_vm14 = vcmp.ge.f32.partialorder %v714_v49, 0.0  ;;  %v908_v52 = vmul.f32 %v1447_v33, %v714_v49  ;;  %vm809_vm15 = vcmp.ge.f32.partialorder %v1240_v50, 0.0  ;;  %v1272_v53 = vpop.f32.mrb[14].mxu1  ;;  %v589_v54 = vpop.f32.mrb[15].mxu0 }
 0x101   : > { %1007 = vst.msk [vmem:[%s1452_s26 + $0x70] sm:$0xff] %vm992_vm2, %v942_v51  ;;  %v974_v55 = vsel %vm840_vm12, %v1271_v45, %v910_v47  ;;  %v940_v56 = vsel %vm806_vm13, %v586_v46, %v876_v48  ;;  %v879_v57 = vmul.f32 %v1240_v50, %v1447_v33  ;;  %vm841_vm0 = vcmp.ge.f32.partialorder %v1272_v53, 0.0  ;;  %v717_v58 = vpop.f32.mrb[15].mxu1 }
 0x102   : > { %1039 = vst.msk [vmem:[%s1452_s26 + $0x170] sm:$0xff] %vm992_vm2, %v974_v55  ;;  %1005 = vst.msk [vmem:[%s1452_s26 + $0x60] sm:$0xff] %vm992_vm2, %v940_v56  ;;  %v972_v59 = vsel %vm838_vm14, %v714_v49, %v908_v52  ;;  %v911_v60 = vmul.f32 %v1272_v53, %v1447_v33  ;;  %vm807_vm1 = vcmp.ge.f32.partialorder %v589_v54, 0.0  ;;  %v877_v61 = vmul.f32 %v1447_v33, %v589_v54 }
 0x103   : > { %1037 = vst.msk [vmem:[%s1452_s26 + $0x160] sm:$0xff] %vm992_vm2, %v972_v59  ;;  %v943_v62 = vsel %vm809_vm15, %v1240_v50, %v879_v57  ;;  %vm839_vm3 = vcmp.ge.f32.partialorder %v717_v58, 0.0  ;;  %v909_v63 = vmul.f32 %v1447_v33, %v717_v58 }
 0x104   : > { %1008 = vst.msk [vmem:[%s1452_s26 + $0x78] sm:$0xff] %vm992_vm2, %v943_v62  ;;  %v975_v0 = vsel %vm841_vm0, %v1272_v53, %v911_v60  ;;  %v941_v1 = vsel %vm807_vm1, %v589_v54, %v877_v61 }
 0x105   : > { %1040 = vst.msk [vmem:[%s1452_s26 + $0x178] sm:$0xff] %vm992_vm2, %v975_v0  ;;  %1006 = vst.msk [vmem:[%s1452_s26 + $0x68] sm:$0xff] %vm992_vm2, %v941_v1  ;;  %v973_v2 = vsel %vm839_vm3, %v717_v58, %v909_v63  ;;  %v1243_v3 = vpop.f32.mrb[16].mxu0 }
 0x106   : > { %1038 = vst.msk [vmem:[%s1452_s26 + $0x168] sm:$0xff] %vm992_vm2, %v973_v2  ;;  %vm812_vm4 = vcmp.ge.f32.partialorder %v1243_v3, 0.0  ;;  %v882_v4 = vmul.f32 %v1243_v3, %v1447_v33  ;;  %v1275_v5 = vpop.f32.mrb[16].mxu1  ;;  %v602_v6 = vpop.f32.mrb[17].mxu0 }
 0x107   : > { %vm844_vm5 = vcmp.ge.f32.partialorder %v1275_v5, 0.0  ;;  %v914_v7 = vmul.f32 %v1275_v5, %v1447_v33  ;;  %vm810_vm6 = vcmp.ge.f32.partialorder %v602_v6, 0.0  ;;  %v880_v8 = vmul.f32 %v1447_v33, %v602_v6  ;;  %v730_v9 = vpop.f32.mrb[17].mxu1  ;;  %v1244_v10 = vpop.f32.mrb[18].mxu0 }
 0x108   : > { %v946_v11 = vsel %vm812_vm4, %v1243_v3, %v882_v4  ;;  %vm842_vm7 = vcmp.ge.f32.partialorder %v730_v9, 0.0  ;;  %v912_v12 = vmul.f32 %v1447_v33, %v730_v9  ;;  %vm813_vm8 = vcmp.ge.f32.partialorder %v1244_v10, 0.0  ;;  %v1276_v13 = vpop.f32.mrb[18].mxu1  ;;  %v605_v14 = vpop.f32.mrb[19].mxu0 }
 0x109   : > { %1011 = vst.msk [vmem:[%s1452_s26 + $0x90] sm:$0xff] %vm992_vm2, %v946_v11  ;;  %v978_v15 = vsel %vm844_vm5, %v1275_v5, %v914_v7  ;;  %v944_v16 = vsel %vm810_vm6, %v602_v6, %v880_v8  ;;  %v883_v17 = vmul.f32 %v1244_v10, %v1447_v33  ;;  %vm845_vm9 = vcmp.ge.f32.partialorder %v1276_v13, 0.0  ;;  %v733_v18 = vpop.f32.mrb[19].mxu1 }
 0x10a   : > { %1043 = vst.msk [vmem:[%s1452_s26 + $0x190] sm:$0xff] %vm992_vm2, %v978_v15  ;;  %1009 = vst.msk [vmem:[%s1452_s26 + $0x80] sm:$0xff] %vm992_vm2, %v944_v16  ;;  %v976_v19 = vsel %vm842_vm7, %v730_v9, %v912_v12  ;;  %v915_v20 = vmul.f32 %v1276_v13, %v1447_v33  ;;  %vm811_vm10 = vcmp.ge.f32.partialorder %v605_v14, 0.0  ;;  %v881_v21 = vmul.f32 %v1447_v33, %v605_v14 }
 0x10b   : > { %1041 = vst.msk [vmem:[%s1452_s26 + $0x180] sm:$0xff] %vm992_vm2, %v976_v19  ;;  %v947_v22 = vsel %vm813_vm8, %v1244_v10, %v883_v17  ;;  %vm843_vm11 = vcmp.ge.f32.partialorder %v733_v18, 0.0  ;;  %v913_v23 = vmul.f32 %v1447_v33, %v733_v18 }
 0x10c   : > { %1012 = vst.msk [vmem:[%s1452_s26 + $0x98] sm:$0xff] %vm992_vm2, %v947_v22  ;;  %v979_v24 = vsel %vm845_vm9, %v1276_v13, %v915_v20  ;;  %v945_v25 = vsel %vm811_vm10, %v605_v14, %v881_v21 }
 0x10d   : > { %1044 = vst.msk [vmem:[%s1452_s26 + $0x198] sm:$0xff] %vm992_vm2, %v979_v24  ;;  %1010 = vst.msk [vmem:[%s1452_s26 + $0x88] sm:$0xff] %vm992_vm2, %v945_v25  ;;  %v977_v26 = vsel %vm843_vm11, %v733_v18, %v913_v23  ;;  %v1247_v27 = vpop.f32.mrb[20].mxu0 }
 0x10e   : > { %1042 = vst.msk [vmem:[%s1452_s26 + $0x188] sm:$0xff] %vm992_vm2, %v977_v26  ;;  %vm816_vm12 = vcmp.ge.f32.partialorder %v1247_v27, 0.0  ;;  %v886_v28 = vmul.f32 %v1247_v27, %v1447_v33  ;;  %v1279_v29 = vpop.f32.mrb[20].mxu1  ;;  %v618_v30 = vpop.f32.mrb[21].mxu0 }
 0x10f   : > { %vm848_vm13 = vcmp.ge.f32.partialorder %v1279_v29, 0.0  ;;  %v918_v31 = vmul.f32 %v1279_v29, %v1447_v33  ;;  %vm814_vm14 = vcmp.ge.f32.partialorder %v618_v30, 0.0  ;;  %v884_v32 = vmul.f32 %v1447_v33, %v618_v30  ;;  %v746_v34 = vpop.f32.mrb[21].mxu1  ;;  %v1248_v35 = vpop.f32.mrb[22].mxu0 }
 0x110   : > { %v950_v36 = vsel %vm816_vm12, %v1247_v27, %v886_v28  ;;  %vm846_vm15 = vcmp.ge.f32.partialorder %v746_v34, 0.0  ;;  %v916_v37 = vmul.f32 %v1447_v33, %v746_v34  ;;  %vm817_vm0 = vcmp.ge.f32.partialorder %v1248_v35, 0.0  ;;  %v1280_v38 = vpop.f32.mrb[22].mxu1  ;;  %v621_v39 = vpop.f32.mrb[23].mxu0 }
 0x111   : > { %1015 = vst.msk [vmem:[%s1452_s26 + $0xb0] sm:$0xff] %vm992_vm2, %v950_v36  ;;  %v982_v40 = vsel %vm848_vm13, %v1279_v29, %v918_v31  ;;  %v948_v41 = vsel %vm814_vm14, %v618_v30, %v884_v32  ;;  %v887_v42 = vmul.f32 %v1248_v35, %v1447_v33  ;;  %vm849_vm1 = vcmp.ge.f32.partialorder %v1280_v38, 0.0  ;;  %v749_v43 = vpop.f32.mrb[23].mxu1 }
 0x112   : > { %1047 = vst.msk [vmem:[%s1452_s26 + $0x1b0] sm:$0xff] %vm992_vm2, %v982_v40  ;;  %1013 = vst.msk [vmem:[%s1452_s26 + $0xa0] sm:$0xff] %vm992_vm2, %v948_v41  ;;  %v980_v44 = vsel %vm846_vm15, %v746_v34, %v916_v37  ;;  %v919_v45 = vmul.f32 %v1280_v38, %v1447_v33  ;;  %vm815_vm3 = vcmp.ge.f32.partialorder %v621_v39, 0.0  ;;  %v885_v46 = vmul.f32 %v1447_v33, %v621_v39 }
 0x113   : > { %1045 = vst.msk [vmem:[%s1452_s26 + $0x1a0] sm:$0xff] %vm992_vm2, %v980_v44  ;;  %v951_v47 = vsel %vm817_vm0, %v1248_v35, %v887_v42  ;;  %vm847_vm4 = vcmp.ge.f32.partialorder %v749_v43, 0.0  ;;  %v917_v48 = vmul.f32 %v1447_v33, %v749_v43 }
 0x114   : > { %1016 = vst.msk [vmem:[%s1452_s26 + $0xb8] sm:$0xff] %vm992_vm2, %v951_v47  ;;  %v983_v49 = vsel %vm849_vm1, %v1280_v38, %v919_v45  ;;  %v949_v50 = vsel %vm815_vm3, %v621_v39, %v885_v46 }
 0x115   : > { %1048 = vst.msk [vmem:[%s1452_s26 + $0x1b8] sm:$0xff] %vm992_vm2, %v983_v49  ;;  %1014 = vst.msk [vmem:[%s1452_s26 + $0xa8] sm:$0xff] %vm992_vm2, %v949_v50  ;;  %v981_v51 = vsel %vm847_vm4, %v749_v43, %v917_v48  ;;  %v1251_v52 = vpop.f32.mrb[24].mxu0 }
 0x116   : > { %1046 = vst.msk [vmem:[%s1452_s26 + $0x1a8] sm:$0xff] %vm992_vm2, %v981_v51  ;;  %vm820_vm5 = vcmp.ge.f32.partialorder %v1251_v52, 0.0  ;;  %v890_v53 = vmul.f32 %v1251_v52, %v1447_v33  ;;  %v1283_v54 = vpop.f32.mrb[24].mxu1  ;;  %v634_v55 = vpop.f32.mrb[25].mxu0 }
 0x117   : > { %vm852_vm6 = vcmp.ge.f32.partialorder %v1283_v54, 0.0  ;;  %v922_v56 = vmul.f32 %v1283_v54, %v1447_v33  ;;  %vm818_vm7 = vcmp.ge.f32.partialorder %v634_v55, 0.0  ;;  %v888_v57 = vmul.f32 %v1447_v33, %v634_v55  ;;  %v762_v58 = vpop.f32.mrb[25].mxu1  ;;  %v1252_v59 = vpop.f32.mrb[26].mxu0 }
 0x118   : > { %v954_v60 = vsel %vm820_vm5, %v1251_v52, %v890_v53  ;;  %vm850_vm8 = vcmp.ge.f32.partialorder %v762_v58, 0.0  ;;  %v920_v61 = vmul.f32 %v1447_v33, %v762_v58  ;;  %vm821_vm9 = vcmp.ge.f32.partialorder %v1252_v59, 0.0  ;;  %v1284_v62 = vpop.f32.mrb[26].mxu1  ;;  %v637_v63 = vpop.f32.mrb[27].mxu0 }
 0x119   : > { %1019 = vst.msk [vmem:[%s1452_s26 + $0xd0] sm:$0xff] %vm992_vm2, %v954_v60  ;;  %v986_v0 = vsel %vm852_vm6, %v1283_v54, %v922_v56  ;;  %v952_v1 = vsel %vm818_vm7, %v634_v55, %v888_v57  ;;  %v891_v2 = vmul.f32 %v1252_v59, %v1447_v33  ;;  %vm853_vm10 = vcmp.ge.f32.partialorder %v1284_v62, 0.0  ;;  %v765_v3 = vpop.f32.mrb[27].mxu1 }
 0x11a   : > { %1051 = vst.msk [vmem:[%s1452_s26 + $0x1d0] sm:$0xff] %vm992_vm2, %v986_v0  ;;  %1017 = vst.msk [vmem:[%s1452_s26 + $0xc0] sm:$0xff] %vm992_vm2, %v952_v1  ;;  %v984_v4 = vsel %vm850_vm8, %v762_v58, %v920_v61  ;;  %v923_v5 = vmul.f32 %v1284_v62, %v1447_v33  ;;  %vm819_vm11 = vcmp.ge.f32.partialorder %v637_v63, 0.0  ;;  %v889_v6 = vmul.f32 %v1447_v33, %v637_v63 }
 0x11b   : > { %1049 = vst.msk [vmem:[%s1452_s26 + $0x1c0] sm:$0xff] %vm992_vm2, %v984_v4  ;;  %v955_v7 = vsel %vm821_vm9, %v1252_v59, %v891_v2  ;;  %vm851_vm12 = vcmp.ge.f32.partialorder %v765_v3, 0.0  ;;  %v921_v8 = vmul.f32 %v1447_v33, %v765_v3 }
 0x11c   : > { %1020 = vst.msk [vmem:[%s1452_s26 + $0xd8] sm:$0xff] %vm992_vm2, %v955_v7  ;;  %v987_v9 = vsel %vm853_vm10, %v1284_v62, %v923_v5  ;;  %v953_v10 = vsel %vm819_vm11, %v637_v63, %v889_v6 }
 0x11d   : > { %1052 = vst.msk [vmem:[%s1452_s26 + $0x1d8] sm:$0xff] %vm992_vm2, %v987_v9  ;;  %1018 = vst.msk [vmem:[%s1452_s26 + $0xc8] sm:$0xff] %vm992_vm2, %v953_v10  ;;  %v985_v11 = vsel %vm851_vm12, %v765_v3, %v921_v8  ;;  %v1255_v12 = vpop.f32.mrb[28].mxu0 }
 0x11e   : > { %1050 = vst.msk [vmem:[%s1452_s26 + $0x1c8] sm:$0xff] %vm992_vm2, %v985_v11  ;;  %vm824_vm13 = vcmp.ge.f32.partialorder %v1255_v12, 0.0  ;;  %v894_v13 = vmul.f32 %v1255_v12, %v1447_v33  ;;  %v1287_v14 = vpop.f32.mrb[28].mxu1  ;;  %v650_v15 = vpop.f32.mrb[29].mxu0 }
 0x11f   : > { %vm856_vm14 = vcmp.ge.f32.partialorder %v1287_v14, 0.0  ;;  %v926_v16 = vmul.f32 %v1287_v14, %v1447_v33  ;;  %vm822_vm15 = vcmp.ge.f32.partialorder %v650_v15, 0.0  ;;  %v892_v17 = vmul.f32 %v1447_v33, %v650_v15  ;;  %v778_v18 = vpop.f32.mrb[29].mxu1  ;;  %v1256_v19 = vpop.f32.mrb[30].mxu0 }
 0x120   : > { %v958_v20 = vsel %vm824_vm13, %v1255_v12, %v894_v13  ;;  %vm854_vm0 = vcmp.ge.f32.partialorder %v778_v18, 0.0  ;;  %v924_v21 = vmul.f32 %v1447_v33, %v778_v18  ;;  %vm825_vm1 = vcmp.ge.f32.partialorder %v1256_v19, 0.0  ;;  %v1288_v22 = vpop.f32.mrb[30].mxu1  ;;  %v653_v23 = vpop.f32.mrb[31].mxu0 }
 0x121   : > { %1023 = vst.msk [vmem:[%s1452_s26 + $0xf0] sm:$0xff] %vm992_vm2, %v958_v20  ;;  %v990_v24 = vsel %vm856_vm14, %v1287_v14, %v926_v16  ;;  %v956_v25 = vsel %vm822_vm15, %v650_v15, %v892_v17  ;;  %v895_v26 = vmul.f32 %v1256_v19, %v1447_v33  ;;  %vm857_vm3 = vcmp.ge.f32.partialorder %v1288_v22, 0.0  ;;  %v781_v27 = vpop.f32.mrb[31].mxu1 }
 0x122   : > { %1055 = vst.msk [vmem:[%s1452_s26 + $0x1f0] sm:$0xff] %vm992_vm2, %v990_v24  ;;  %1021 = vst.msk [vmem:[%s1452_s26 + $0xe0] sm:$0xff] %vm992_vm2, %v956_v25  ;;  %v988_v28 = vsel %vm854_vm0, %v778_v18, %v924_v21  ;;  %v927_v29 = vmul.f32 %v1288_v22, %v1447_v33  ;;  %vm823_vm4 = vcmp.ge.f32.partialorder %v653_v23, 0.0  ;;  %v893_v30 = vmul.f32 %v1447_v33, %v653_v23 }
 0x123   : > { %1053 = vst.msk [vmem:[%s1452_s26 + $0x1e0] sm:$0xff] %vm992_vm2, %v988_v28  ;;  %v959_v31 = vsel %vm825_vm1, %v1256_v19, %v895_v26  ;;  %vm855_vm5 = vcmp.ge.f32.partialorder %v781_v27, 0.0  ;;  %v925_v32 = vmul.f32 %v1447_v33, %v781_v27 }
 0x124   : > { %1024 = vst.msk [vmem:[%s1452_s26 + $0xf8] sm:$0xff] %vm992_vm2, %v959_v31  ;;  %v991_v34 = vsel %vm857_vm3, %v1288_v22, %v927_v29  ;;  %v957_v35 = vsel %vm823_vm4, %v653_v23, %v893_v30 }
 0x125   : > { %1056 = vst.msk [vmem:[%s1452_s26 + $0x1f8] sm:$0xff] %vm992_vm2, %v991_v34  ;;  %1022 = vst.msk [vmem:[%s1452_s26 + $0xe8] sm:$0xff] %vm992_vm2, %v957_v35  ;;  %v989_v36 = vsel %vm855_vm5, %v781_v27, %v925_v32 }
 0x126   : > { %1054 = vst.msk [vmem:[%s1452_s26 + $0x1e8] sm:$0xff] %vm992_vm2, %v989_v36 }
 0x127 PF: > { %s13_s12 = sadd.s32 1, %s1338_s12  }
 0x128   : > { %p10_p4 = scmp.ge.s32.totalorder %s13_s12, 4  }
 0x12a   :  { %12 = sbr.rel (!%p10_p4) target bundleno = 1 (0x1), region = 62 }

</bundles_post_ra>
